<compile_context>
chip_gen: v7x
topology: tpu7x:2x2x1
jax: 0.10.0
libtpu: 0.0.40
codegen_flags: <defaults>
</compile_context>

<pallas_src>
import functools

import jax
import jax.numpy as jnp
from jax.experimental import pallas as pl
from jax.experimental.pallas import tpu as pltpu

LANE = 128
DEFAULT_TILE_ROWS = 2048   # 2048x128xf32 = 1 MiB / input / buffer


def _round_up(x, m):
    return ((x + m - 1) // m) * m


def _default_num_cores():
    """2 TensorCores per chip on v7x, 1 on v5e/v6e. Fallback: 1 (safe everywhere)."""
    try:
        kind = jax.devices()[0].device_kind.lower()
    except Exception:
        return 1
    return 2 if ("v7" in kind or "7x" in kind) else 1


def _focal_kernel(pred_ref, true_ref, out_ref, *,
                  gamma, alpha, n_elements, tile_rows, steps_per_core,
                  mask_possible, assume_binary_targets):
    c = pl.program_id(0)                 # core / partial-sum slot (parallel)
    j = pl.program_id(1)                 # row-tile step within this core (arbitrary)
    step = c * steps_per_core + j        # global block index (unclamped)
    block_elems = tile_rows * LANE

    @pl.when(j == 0)
    def _():
        out_ref[...] = jnp.zeros_like(out_ref)

    x = pred_ref[...].astype(jnp.float32)   # logits
    t = true_ref[...].astype(jnp.float32)   # targets

    if assume_binary_targets:
        # Hard 0/1 labels only: bce = softplus(s), 1 - p_t = sigmoid(s), s = (1-2t)*x.
        s = (1.0 - 2.0 * t) * x
        e = jnp.exp(-jnp.abs(s))
        bce = jnp.maximum(s, 0.0) + jnp.log1p(e)
        denom = 1.0 + e
        r = pl.reciprocal(denom, approx=True)
        r = r * (2.0 - denom * r)                       # one Newton step -> ~exact f32
        u = jnp.where(s >= 0.0, 1.0, e) * r             # sigmoid(s) == 1 - p_t
        alpha_factor = jnp.where(t > 0.5, alpha, 1.0 - alpha)
    else:
        # General (soft-label capable) path, matches nn.BCEWithLogitsLoss exactly.
        e = jnp.exp(-jnp.abs(x))
        bce = jnp.maximum(x, 0.0) - x * t + jnp.log1p(e)
        denom = 1.0 + e
        r = pl.reciprocal(denom, approx=True)
        r = r * (2.0 - denom * r)                       # Newton refinement (~free VALU)
        pred_prob = jnp.where(x >= 0.0, 1.0, e) * r     # sigmoid(x), reuses e (no 2nd exp)
        p_t = t * pred_prob + (1.0 - t) * (1.0 - pred_prob)
        alpha_factor = t * alpha + (1.0 - t) * (1.0 - alpha)
        u = jnp.maximum(1.0 - p_t, 0.0)

    if gamma == 1.5:
        modulating_factor = u * jnp.sqrt(u)
    elif gamma == 2.0:
        modulating_factor = u * u
    elif gamma == 1.0:
        modulating_factor = u
    else:
        modulating_factor = u ** gamma    # generic fallback (exp+log)

    loss = bce * alpha_factor * modulating_factor

    def _fold(v):
        # (tile_rows,128) -> (tile_rows//8, 8, 128) -> sum over leading axis:
        # pure vreg-wise VPU adds into a single tile-aligned (8,128) accumulator.
        return v.reshape(tile_rows // 8, 8, LANE).sum(axis=0)

    if mask_possible:
        needs_mask = (step + 1) * block_elems > n_elements

        @pl.when(needs_mask)       # only the ragged final / dead block pays for the mask
        def _():
            base = step * block_elems
            row = jax.lax.broadcasted_iota(jnp.int32, (tile_rows, LANE), 0)
            lane = jax.lax.broadcasted_iota(jnp.int32, (tile_rows, LANE), 1)
            idx = base + row * LANE + lane
            out_ref[...] += _fold(jnp.where(idx < n_elements, loss, 0.0))

        @pl.when(jnp.logical_not(needs_mask))
        def _():
            out_ref[...] += _fold(loss)
    else:
        out_ref[...] += _fold(loss)


def focal_loss(pred, true, gamma=1.5, alpha=0.25,
               tile_rows=DEFAULT_TILE_ROWS, num_cores=None,
               assume_binary_targets=False):
    """Pallas TPU focal loss. Returns a scalar (mean reduction), like the torch module."""
    assert pred.shape == true.shape
    n = int(pred.size)
    assert n > 0
    assert n < 2 ** 31, "int32 element-index arithmetic would overflow"

    if num_cores is None:
        num_cores = _default_num_cores()

    flat_p = pred.reshape(-1)   # keep native dtype; cast to f32 in-kernel
    flat_t = true.reshape(-1)

    # Minimal padding: only to an (8*128)-element multiple so the 2-D reshape and
    # sublane tiling line up; nothing at all when already aligned.  Ragged blocks are
    # handled by the in-kernel mask instead of wrapper-side padding.
    padded = _round_up(n, 8 * LANE)
    pad = padded - n
    if pad:
        flat_p = jnp.pad(flat_p, (0, pad))
        flat_t = jnp.pad(flat_t, (0, pad))

    rows = padded // LANE                      # multiple of 8
    tile_rows = max(8, min(_round_up(int(tile_rows), 8), rows))
    block_elems = tile_rows * LANE

    total_steps = pl.cdiv(rows, tile_rows)
    num_cores = max(1, min(int(num_cores), total_steps))
    steps_per_core = pl.cdiv(total_steps, num_cores)
    grid_cover = num_cores * steps_per_core * block_elems
    mask_possible = grid_cover > n             # any block touching padded / OOB elements?
    has_dead_steps = num_cores * steps_per_core > total_steps

    p2 = flat_p.reshape(rows, LANE)
    t2 = flat_t.reshape(rows, LANE)

    kernel = functools.partial(
        _focal_kernel, gamma=gamma, alpha=alpha, n_elements=n,
        tile_rows=tile_rows, steps_per_core=steps_per_core,
        mask_possible=mask_possible, assume_binary_targets=assume_binary_targets)

    last_block = total_steps - 1
    if has_dead_steps:
        # Clamp so a dead trailing step on core 1 never DMAs out of bounds; its
        # contribution is zeroed by the in-kernel index mask.
        def in_index(c, j):
            return (jnp.minimum(c * steps_per_core + j, last_block), 0)
    else:
        def in_index(c, j):
            return (c * steps_per_core + j, 0)

    in_spec = pl.BlockSpec((tile_rows, LANE), in_index)

    partials = pl.pallas_call(
        kernel,
        out_shape=jax.ShapeDtypeStruct((num_cores * 8, LANE), jnp.float32),
        grid_spec=pltpu.PrefetchScalarGridSpec(
            num_scalar_prefetch=0,
            grid=(num_cores, steps_per_core),
            in_specs=[in_spec, in_spec],
            out_specs=pl.BlockSpec((8, LANE), lambda c, j: (c, 0)),
        ),
        compiler_params=pltpu.CompilerParams(
            dimension_semantics=("parallel", "arbitrary"),
        ),
    )(p2, t2)

    # Final cross-sublane / cross-lane / cross-core reduction and mean.
    return jnp.sum(partials) / jnp.float32(n)


def _focal_loss_ref(pred, true, gamma=1.5, alpha=0.25):
    x = pred.astype(jnp.float32)
    t = true.astype(jnp.float32)
    bce = jnp.maximum(x, 0.0) - x * t + jnp.log1p(jnp.exp(-jnp.abs(x)))
    p = jax.nn.sigmoid(x)
    p_t = t * p + (1 - t) * (1 - p)
    alpha_factor = t * alpha + (1 - t) * (1 - alpha)
    mod = (1.0 - p_t) ** gamma
    return jnp.mean(bce * alpha_factor * mod)


if __name__ == "__main__":
    key = jax.random.PRNGKey(0)
    kp, kt, kp2, kt2 = jax.random.split(key, 4)

    # Dense-prediction style logits/targets (NCHW), lane-aligned size.
    pred = jax.random.normal(kp, (2, 4, 16, 16), dtype=jnp.float32)
    true = (jax.random.uniform(kt, (2, 4, 16, 16)) > 0.5).astype(jnp.float32)

    out = focal_loss(pred, true, gamma=1.5, alpha=0.25)
    out = jax.block_until_ready(out)
    ref = _focal_loss_ref(pred, true, gamma=1.5, alpha=0.25)
    assert jnp.allclose(out, ref, rtol=1e-3, atol=1e-6), (out, ref)

    # Ragged (non lane-aligned) size to exercise the masked-tail path.
    pred2 = jax.random.normal(kp2, (3, 5, 7, 11), dtype=jnp.float32)
    true2 = (jax.random.uniform(kt2, (3, 5, 7, 11)) > 0.5).astype(jnp.float32)
    out2 = jax.block_until_ready(focal_loss(pred2, true2, gamma=1.5, alpha=0.25))
    ref2 = _focal_loss_ref(pred2, true2, gamma=1.5, alpha=0.25)
    assert jnp.allclose(out2, ref2, rtol=1e-3, atol=1e-6), (out2, ref2)

    print("KERNEL_OK")
</pallas_src>

<mosaic_0001>
module attributes {stable_mosaic.version = 11 : i64} {
  func.func @_focal_kernel(%arg0: i32, %arg1: i32, %arg2: memref<16x128xf32, #tpu.memory_space<vmem>>, %arg3: memref<16x128xf32, #tpu.memory_space<vmem>>, %arg4: memref<8x128xf32, #tpu.memory_space<vmem>>) attributes {dimension_semantics = [#tpu.dimension_semantics<parallel>, #tpu.dimension_semantics<arbitrary>], iteration_bounds = array<i64: 1, 1>, scalar_prefetch = 0 : i64, scratch_operands = 0 : i64, tpu.core_type = #tpu.core_type<tc>, window_params = [{transform_indices = @transform_0, window_bounds = array<i64: 16, 128>}, {transform_indices = @transform_1, window_bounds = array<i64: 16, 128>}, {transform_indices = @transform_2, window_bounds = array<i64: 8, 128>}]} {
    %c0_i32 = arith.constant 0 : i32
    %0 = arith.cmpi eq, %arg1, %c0_i32 : i32
    %1 = arith.extui %0 : i1 to i32
    %c0_i32_0 = arith.constant 0 : i32
    %2 = arith.cmpi ne, %1, %c0_i32_0 : i32
    scf.if %2 {
      %cst_21 = arith.constant 0.000000e+00 : f32
      %54 = vector.broadcast %cst_21 : f32 to vector<8x128xf32>
      %c0_22 = arith.constant 0 : index
      %c0_23 = arith.constant 0 : index
      %55 = vector.load %arg4[%c0_22, %c0_23] : memref<8x128xf32, #tpu.memory_space<vmem>>, vector<8x128xf32>
      tpu.vector_store %arg4[%c0_22, %c0_23], %54 {strides = array<i32>} : memref<8x128xf32, #tpu.memory_space<vmem>>, vector<8x128xf32>,
    } else {
    }
    %c0 = arith.constant 0 : index
    %c0_1 = arith.constant 0 : index
    %3 = vector.load %arg2[%c0, %c0_1] : memref<16x128xf32, #tpu.memory_space<vmem>>, vector<16x128xf32>
    %c0_2 = arith.constant 0 : index
    %c0_3 = arith.constant 0 : index
    %4 = vector.load %arg3[%c0_2, %c0_3] : memref<16x128xf32, #tpu.memory_space<vmem>>, vector<16x128xf32>
    %5 = math.absf %3 : vector<16x128xf32>
    %cst = arith.constant 0.000000e+00 : f32
    %6 = vector.broadcast %cst : f32 to vector<16x128xf32>
    %7 = arith.subf %6, %5 : vector<16x128xf32>
    %8 = math.exp %7 : vector<16x128xf32>
    %cst_4 = arith.constant 0.000000e+00 : f32
    %9 = vector.broadcast %cst_4 : f32 to vector<16x128xf32>
    %10 = arith.maximumf %3, %9 : vector<16x128xf32>
    %11 = arith.mulf %3, %4 : vector<16x128xf32>
    %12 = arith.subf %10, %11 : vector<16x128xf32>
    %13 = math.log1p %8 : vector<16x128xf32>
    %14 = arith.addf %12, %13 : vector<16x128xf32>
    %cst_5 = arith.constant 1.000000e+00 : f32
    %15 = vector.broadcast %cst_5 : f32 to vector<16x128xf32>
    %16 = arith.addf %15, %8 : vector<16x128xf32>
    %17 = tpu.reciprocal %16 {approx = true} : vector<16x128xf32> -> vector<16x128xf32>
    %18 = arith.mulf %16, %17 : vector<16x128xf32>
    %cst_6 = arith.constant 2.000000e+00 : f32
    %19 = vector.broadcast %cst_6 : f32 to vector<16x128xf32>
    %20 = arith.subf %19, %18 : vector<16x128xf32>
    %21 = arith.mulf %17, %20 : vector<16x128xf32>
    %cst_7 = arith.constant 0.000000e+00 : f32
    %22 = vector.broadcast %cst_7 : f32 to vector<16x128xf32>
    %23 = arith.cmpf oge, %3, %22 : vector<16x128xf32>
    %cst_8 = arith.constant 1.000000e+00 : f32
    %24 = vector.broadcast %cst_8 : f32 to vector<16x128xf32>
    %25 = arith.select %23, %24, %8 : vector<16x128xi1>, vector<16x128xf32>
    %26 = arith.mulf %25, %21 : vector<16x128xf32>
    %27 = arith.mulf %4, %26 : vector<16x128xf32>
    %cst_9 = arith.constant 1.000000e+00 : f32
    %28 = vector.broadcast %cst_9 : f32 to vector<16x128xf32>
    %29 = arith.subf %28, %4 : vector<16x128xf32>
    %cst_10 = arith.constant 1.000000e+00 : f32
    %30 = vector.broadcast %cst_10 : f32 to vector<16x128xf32>
    %31 = arith.subf %30, %26 : vector<16x128xf32>
    %32 = arith.mulf %29, %31 : vector<16x128xf32>
    %33 = arith.addf %27, %32 : vector<16x128xf32>
    %cst_11 = arith.constant 2.500000e-01 : f32
    %34 = vector.broadcast %cst_11 : f32 to vector<16x128xf32>
    %35 = arith.mulf %4, %34 : vector<16x128xf32>
    %cst_12 = arith.constant 1.000000e+00 : f32
    %36 = vector.broadcast %cst_12 : f32 to vector<16x128xf32>
    %37 = arith.subf %36, %4 : vector<16x128xf32>
    %cst_13 = arith.constant 7.500000e-01 : f32
    %38 = vector.broadcast %cst_13 : f32 to vector<16x128xf32>
    %39 = arith.mulf %37, %38 : vector<16x128xf32>
    %40 = arith.addf %35, %39 : vector<16x128xf32>
    %cst_14 = arith.constant 1.000000e+00 : f32
    %41 = vector.broadcast %cst_14 : f32 to vector<16x128xf32>
    %42 = arith.subf %41, %33 : vector<16x128xf32>
    %cst_15 = arith.constant 0.000000e+00 : f32
    %43 = vector.broadcast %cst_15 : f32 to vector<16x128xf32>
    %44 = arith.maximumf %42, %43 : vector<16x128xf32>
    %45 = math.sqrt %44 : vector<16x128xf32>
    %46 = arith.mulf %44, %45 : vector<16x128xf32>
    %47 = arith.mulf %14, %40 : vector<16x128xf32>
    %48 = arith.mulf %47, %46 : vector<16x128xf32>
    %c0_16 = arith.constant 0 : index
    %c0_17 = arith.constant 0 : index
    %49 = vector.load %arg4[%c0_16, %c0_17] : memref<8x128xf32, #tpu.memory_space<vmem>>, vector<8x128xf32>
    %50 = vector.shape_cast %48 : vector<16x128xf32> to vector<2x8x128xf32>
    %cst_18 = arith.constant dense<0.000000e+00> : vector<8x128xf32>
    %51 = vector.multi_reduction <add>, %50, %cst_18 [0] : vector<2x8x128xf32> to vector<8x128xf32>
    %52 = arith.addf %49, %51 : vector<8x128xf32>
    %c0_19 = arith.constant 0 : index
    %c0_20 = arith.constant 0 : index
    %53 = vector.load %arg4[%c0_19, %c0_20] : memref<8x128xf32, #tpu.memory_space<vmem>>, vector<8x128xf32>
    tpu.vector_store %arg4[%c0_19, %c0_20], %52 {strides = array<i32>} : memref<8x128xf32, #tpu.memory_space<vmem>>, vector<8x128xf32>,
    return
  }
  func.func @transform_0(%arg0: i32, %arg1: i32) -> (i32, i32) {
    %c1_i32 = arith.constant 1 : i32
    %0 = arith.muli %arg0, %c1_i32 : i32
    %1 = arith.addi %0, %arg1 : i32
    %c0_i32 = arith.constant 0 : i32
    %c0_i32_0 = arith.constant 0 : i32
    return %1, %c0_i32 : i32, i32
  }
  func.func @transform_1(%arg0: i32, %arg1: i32) -> (i32, i32) {
    %c1_i32 = arith.constant 1 : i32
    %0 = arith.muli %arg0, %c1_i32 : i32
    %1 = arith.addi %0, %arg1 : i32
    %c0_i32 = arith.constant 0 : i32
    %c0_i32_0 = arith.constant 0 : i32
    return %1, %c0_i32 : i32, i32
  }
  func.func @transform_2(%arg0: i32, %arg1: i32) -> (i32, i32) {
    %c0_i32 = arith.constant 0 : i32
    %c0_i32_0 = arith.constant 0 : i32
    return %arg0, %c0_i32 : i32, i32
  }
}

</mosaic_0001>

<bundles_post_ra>
// kernel: tpu_custom_call.1
= control target key start
LH: loop header
LB: loop body
LE: loop exit
PB: predicated region body
PF: predicated region fallthrough
CT: control target
= control target key end

     0   :  { %7 = vsyncpa [#allocation3], 0  ;;  %s333_s0 = inlined_call_operand.hbm [shape: f32[16,128], index: 0, kind: input, shape index: {}]   ;;  %s334_s1 = inlined_call_operand.hbm [shape: f32[16,128], index: 1, kind: input, shape index: {}]   ;;  %s335_s2 = inlined_call_operand.hbm [shape: f32[8,128], index: 2, kind: output, shape index: {}]  }
   0x1   :  { %8 = vsyncpa [#allocation6], 0 }
   0x2   :  { %9 = vsyncpa [#allocation4], 0  ;;  %s265_s9 = smov [#allocation2]   ;;  %s193_s13 = scalar_lea.hbm %s333_s0, 256 }
   0x3   :  { %s19_s10 = sshll.u32 %s265_s9, 4  ;;  %p194_p0 = scmp.ne.s32.totalorder %s333_s0, %s193_s13  ;;  %s20_s10 = int_to_ptr.vmem [resolvable:$true] %s19_s10 }
   0x4   :  { %p197_p1 = scmp.lt.u32.totalorder %s193_s13, %s333_s0 }
   0x6   :  { %p199_p2 = pnand %p197_p1, %p194_p0 }
   0x8   :  { %202 = shalt.err (!%p199_p2)
}
   0x9   :  { %s203_s18 = scalar_lea.vmem %s20_s10, 256  ;;  %p208_p4 = scmp.lt.s32.totalorder %s20_s10, %s20_s10 }
   0xa   :  { %p204_p3 = scmp.ne.s32.totalorder %s20_s10, %s203_s18  ;;  %p209_p5 = scmp.lt.s32.totalorder %s203_s18, %s203_s18 }
   0xc   :  { %p210_p6 = por %p209_p5, %p208_p4 }
   0xe   :  { %p211_p7 = pnand %p210_p6, %p204_p3 }
  0x10   :  { %214 = shalt.err (!%p211_p7)
}
  0x11   :  { %s266_s19 = smov 128   ;;  %s267_s20 = smov 8  }
  0x12   :  { %25 = dma.hbm_to_vmem [thread:$0]  %s333_s0, 256, %s20_s10, [#allocation3], %s266_s19, %s266_s19, %s267_s20  }
  0x13   :  { %s268_s23 = smov [#allocation5]   ;;  %s215_s27 = scalar_lea.hbm %s334_s1, 256 }
  0x14   :  { %s35_s24 = sshll.u32 %s268_s23, 4  ;;  %p216_p8 = scmp.ne.s32.totalorder %s334_s1, %s215_s27  ;;  %s36_s24 = int_to_ptr.vmem [resolvable:$true] %s35_s24 }
  0x15   :  { %p219_p9 = scmp.lt.u32.totalorder %s215_s27, %s334_s1 }
  0x17   :  { %p221_p10 = pnand %p219_p9, %p216_p8 }
  0x19   :  { %224 = shalt.err (!%p221_p10)
}
  0x1a   :  { %s225_s4 = scalar_lea.vmem %s36_s24, 256  ;;  %p230_p12 = scmp.lt.s32.totalorder %s36_s24, %s36_s24 }
  0x1b   :  { %p226_p11 = scmp.ne.s32.totalorder %s36_s24, %s225_s4  ;;  %p231_p13 = scmp.lt.s32.totalorder %s225_s4, %s225_s4 }
  0x1d   :  { %p232_p0 = por %p231_p13, %p230_p12 }
  0x1f   :  { %p233_p1 = pnand %p232_p0, %p226_p11 }
  0x21   :  { %236 = shalt.err (!%p233_p1)
}
  0x22   :  { %41 = dma.hbm_to_vmem [thread:$0]  %s334_s1, 256, %s36_s24, [#allocation6], %s266_s19, %s266_s19, %s267_s20  }
  0x23   :  { %259 = dma.done.wait [#allocation3], 256  }
  0x24   :  { %260 = vsyncadd [#allocation3], 4294967040 }
  0x25   :  { %261 = dma.done.wait [#allocation6], 256  }
  0x26   :  { %262 = vsyncadd [#allocation6], 4294967040  ;;  %v309_v0 = vld [vmem:[#allocation2] sm:$0xff]  ;;  %v311_v1 = vld [vmem:[#allocation2 + $0x8] sm:$0xff]  ;;  %s269_s1 = smov [#allocation7]  }
  0x27   :  { %v61_v2 = vand.u32 2147483647, %v309_v0  ;;  %v62_v3 = vand.u32 2147483647, %v311_v1  ;;  %vm105_vm0 = vcmp.ge.f32.partialorder %v309_v0, 0.0  ;;  %vm106_vm1 = vcmp.ge.f32.partialorder %v311_v1, 0.0 }
  0x28   :  { %v59_v17 = vld [vmem:[#allocation5] sm:$0xff]  ;;  %v60_v20 = vld [vmem:[#allocation5 + $0x8] sm:$0xff]  ;;  %v69_v48 = vmax.f32 %v309_v0, 0.0  ;;  %v70_v50 = vmax.f32 %v311_v1, 0.0  ;;  %s161_s6 = sshll.u32 %s269_s1, 4  ;;  %s162_s6 = int_to_ptr.vmem [resolvable:$true] %s161_s6 }
  0x29   :  { %v63_v4 = vsub.f32 0.0, %v61_v2  ;;  %v64_v5 = vsub.f32 0.0, %v62_v3  ;;  %v113_v25 = vsub.f32 1.0, %v59_v17  ;;  %v114_v27 = vsub.f32 1.0, %v60_v20  ;;  %s237_s7 = scalar_lea.vmem %s162_s6, 128  ;;  %p242_p3 = scmp.lt.s32.totalorder %s162_s6, %s162_s6 }
  0x2a   :  { %v71_v49 = vmul.f32 %v59_v17, %v309_v0  ;;  %v72_v51 = vmul.f32 %v60_v20, %v311_v1  ;;  %v121_v57 = vmul.f32 0.25, %v59_v17  ;;  %v122_v61 = vmul.f32 0.25, %v60_v20  ;;  %p238_p2 = scmp.ne.s32.totalorder %s162_s6, %s237_s7  ;;  %p243_p4 = scmp.lt.s32.totalorder %s237_s7, %s237_s7 }
  0x2b   :  { %v65_v6 = vmul.f32 1.442695, %v63_v4  ;;  %v67_v7 = vmul.f32 1.442695, %v64_v5  ;;  %v123_v58 = vmul.f32 0.75, %v113_v25  ;;  %v124_v62 = vmul.f32 0.75, %v114_v27 }
  0x2c   :  { %v73_v56 = vsub.f32 %v69_v48, %v71_v49  ;;  %v74_v59 = vsub.f32 %v70_v50, %v72_v51  ;;  %p244_p5 = por %p243_p4, %p242_p3 }
  0x2d   :  { %177 = vpow2.f32 %v65_v6  ;;  %v125_v2 = vadd.f32 %v123_v58, %v121_v57  ;;  %v126_v5 = vadd.f32 %v124_v62, %v122_v61 }
  0x2e   :  { %179 = vpow2.f32 %v67_v7  ;;  %p245_p6 = pnand %p244_p5, %p238_p2 }
  0x37   :  { %v178_v8 = vpop.eup %177 }
  0x38   :  { %v180_v9 = vpop.eup %179  ;;  %v75_v10 = vadd.f32 1.0, %v178_v8  ;;  %v107_v19 = vsel %vm105_vm0, 1.0, %v178_v8  ;;  %v78_v34 = vmul.f32 -0.5, %v178_v8  ;;  %v81_v43 = vand.u32 2147483647, %v178_v8 }
  0x39   :  { %v84_v11 = vadd.f32 1.0, %v180_v9  ;;  %v108_v22 = vsel %vm106_vm1, 1.0, %v180_v9  ;;  %v87_v36 = vmul.f32 -0.5, %v180_v9  ;;  %v90_v47 = vand.u32 2147483647, %v180_v9 }
  0x3a   :  { %181 = vrcp.f32 %v75_v10  ;;  %v79_v40 = vadd.f32 1.0, %v78_v34  ;;  %vm82_vm2 = vcmp.lt.f32.partialorder %v81_v43, 0.0004427343 }
  0x3b   :  { %183 = vrcp.f32 %v84_v11  ;;  %v88_v44 = vadd.f32 1.0, %v87_v36  ;;  %vm91_vm3 = vcmp.lt.f32.partialorder %v90_v47, 0.0004427343 }
  0x3c   :  { %185 = vlog2.f32 %v75_v10  ;;  %v80_v53 = vmul.f32 %v178_v8, %v79_v40 }
  0x3d   :  { %187 = vlog2.f32 %v84_v11  ;;  %v89_v55 = vmul.f32 %v180_v9, %v88_v44 }
  0x44   :  { %v182_v12 = vpop.eup %181 }
  0x45   :  { %v184_v13 = vpop.eup %183  ;;  %v99_v14 = vmul.f32 %v182_v12, %v75_v10 }
  0x46   :  { %v100_v15 = vmul.f32 %v184_v13, %v84_v11  ;;  %v186_v42 = vpop.eup %185 }
  0x47   :  { %v101_v16 = vsub.f32 2.0, %v99_v14  ;;  %v188_v46 = vpop.eup %187  ;;  %v77_v52 = vmul.f32 0.6931472, %v186_v42 }
  0x48   :  { %v102_v18 = vsub.f32 2.0, %v100_v15  ;;  %v86_v54 = vmul.f32 0.6931472, %v188_v46 }
  0x49   :  { %v103_v21 = vmul.f32 %v182_v12, %v101_v16  ;;  %v83_v60 = vsel %vm82_vm2, %v80_v53, %v77_v52 }
  0x4a   :  { %v104_v23 = vmul.f32 %v184_v13, %v102_v18  ;;  %v92_v63 = vsel %vm91_vm3, %v89_v55, %v86_v54  ;;  %v93_v0 = vadd.f32 %v83_v60, %v73_v56 }
  0x4b   :  { %v109_v24 = vmul.f32 %v107_v19, %v103_v21  ;;  %v94_v4 = vadd.f32 %v92_v63, %v74_v59 }
  0x4c   :  { %v110_v26 = vmul.f32 %v108_v22, %v104_v23  ;;  %v147_v11 = vmul.f32 %v125_v2, %v93_v0 }
  0x4d   :  { %v111_v28 = vmul.f32 %v109_v24, %v59_v17  ;;  %v115_v29 = vsub.f32 1.0, %v109_v24  ;;  %v148_v14 = vmul.f32 %v126_v5, %v94_v4 }
  0x4e   :  { %v112_v30 = vmul.f32 %v110_v26, %v60_v20  ;;  %v116_v31 = vsub.f32 1.0, %v110_v26 }
  0x4f   :  { %v117_v32 = vmul.f32 %v115_v29, %v113_v25 }
  0x50   :  { %v118_v33 = vmul.f32 %v116_v31, %v114_v27 }
  0x51   :  { %v119_v35 = vadd.f32 %v117_v32, %v111_v28 }
  0x52   :  { %v120_v37 = vadd.f32 %v118_v33, %v112_v30 }
  0x53   :  { %v127_v38 = vsub.f32 1.0, %v119_v35 }
  0x54   :  { %v128_v39 = vsub.f32 1.0, %v120_v37 }
  0x55   :  { %v129_v41 = vmax.f32 %v127_v38, 0.0 }
  0x56   :  { %v130_v45 = vmax.f32 %v128_v39, 0.0 }
  0x57   :  { %189 = vrsqrt.f32 %v129_v41  ;;  %vm133_vm4 = vcmp.eq.f32.partialorder %v129_v41, inf  ;;  %v136_v1 = vand.u32 2147483648, %v129_v41  ;;  %vm135_vm5 = vcmp.eq.f32.partialorder %v129_v41, 0.0 }
  0x58   :  { %191 = vrsqrt.f32 %v130_v45  ;;  %vm140_vm6 = vcmp.eq.f32.partialorder %v130_v45, inf  ;;  %v143_v8 = vand.u32 2147483648, %v130_v45  ;;  %vm142_vm7 = vcmp.eq.f32.partialorder %v130_v45, 0.0 }
  0x61   :  { %v190_v3 = vpop.eup %189 }
  0x62   :  { %v192_v6 = vpop.eup %191  ;;  %v132_v7 = vmul.f32 %v190_v3, %v129_v41 }
  0x63   :  { %v139_v9 = vmul.f32 %v192_v6, %v130_v45 }
  0x64   :  { %v134_v10 = vsel %vm133_vm4, %v129_v41, %v132_v7 }
  0x65   :  { %v137_v12 = vsel %vm135_vm5, %v136_v1, %v134_v10  ;;  %v141_v13 = vsel %vm140_vm6, %v130_v45, %v139_v9 }
  0x66   :  { %v144_v15 = vsel %vm142_vm7, %v143_v8, %v141_v13  ;;  %v145_v16 = vmul.f32 %v137_v12, %v129_v41 }
  0x67   :  { %v146_v17 = vmul.f32 %v144_v15, %v130_v45 }
  0x68   :  { %v149_v18 = vmul.f32 %v147_v11, %v145_v16 }
  0x69   :  { %v150_v19 = vmul.f32 %v148_v14, %v146_v17 }
  0x6b   :  { %v152_v20 = vadd.f32 %v150_v19, %v149_v18 }
  0x6d   :  { %154 = vst [vmem:[#allocation7] sm:$0xff] %v152_v20 }
  0x6e   :  { %248 = shalt.err (!%p245_p6)
}
  0x6f   :  { %s249_s10 = scalar_lea.hbm %s335_s2, 128 }
  0x70   :  { %p250_p7 = scmp.ne.s32.totalorder %s335_s2, %s249_s10  ;;  %p253_p8 = scmp.lt.u32.totalorder %s249_s10, %s335_s2 }
  0x72   :  { %p255_p9 = pnand %p253_p8, %p250_p7 }
  0x74   :  { %258 = shalt.err (!%p255_p9)
}
  0x75   :  { %164 = dma.vmem_to_hbm [thread:$0]  %s162_s6, 128, %s335_s2, [#allocation4]  }
  0x76   :  { %263 = dma.done.wait [#allocation4], 128  }
  0x77   :  { %264 = vsyncadd [#allocation4], 4294967168 }
  0x78   :  { %168 = vsyncpa [#allocation3], 1 }
  0x79   :  { %169 = vsyncpa [#allocation6], 1 }
  0x7a   :  { %170 = vsyncpa [#allocation4], 1 }

</bundles_post_ra>
